<compile_context>
chip_gen: v7x
topology: tpu7x:2x2x1
jax: 0.10.0
libtpu: 0.0.40
codegen_flags: <defaults>
</compile_context>

<pallas_src>
import functools

import jax
import jax.numpy as jnp
from jax import lax
from jax.experimental import pallas as pl
from jax.experimental.pallas import tpu as pltpu

IGNORE_INDEX = 255
SMOOTH_FACTOR = 0.05   # SoftCrossEntropyLoss(smooth_factor=0.05)
DICE_SMOOTH = 0.05     # DiceLoss(smooth=0.05)
DICE_EPS = 1e-7        # DiceLoss eps (clamp_min of denominator)


def _stats_kernel(*refs, hw, tile_p, c, n_inputs, ragged):
    """Accumulate per-class loss statistics over lane-dense pixel tiles.

    refs = (logits_0, [logits_1, ...], labels, out)
      logits_k : (C, TILE_P) float block (classes on sublanes, pixels on lanes)
      labels   : (1, TILE_P) int32 block
      out      : (C, NSTATS) float32, resident accumulator per batch element
                 columns: 0 intersection, 1 pred_sum, 2 true_sum,
                          3 nll_sum, 4 smooth_sum, then (nll, smooth) per aux.
    """
    out_ref = refs[-1]
    lbl_ref = refs[-2]
    logit_refs = refs[:n_inputs]

    @pl.when(pl.program_id(1) == 0)
    def _():
        out_ref[...] = jnp.zeros_like(out_ref)

    lbl = lbl_ref[...]                                   # (1, TILE_P) int32

    if ragged:
        # True pixel count handled in-kernel (no HBM padding of the inputs).
        pix = pl.program_id(1) * tile_p + lax.broadcasted_iota(
            jnp.int32, (1, tile_p), 1)
        in_bounds = pix < hw
        valid = jnp.logical_and(in_bounds, lbl != IGNORE_INDEX)
    else:
        in_bounds = None
        valid = lbl != IGNORE_INDEX
    vmask = valid.astype(jnp.float32)                    # (1, TILE_P)

    cls = lax.broadcasted_iota(jnp.int32, (c, tile_p), 0)
    onehot_m = jnp.where(cls == lbl, vmask, 0.0)         # masked one-hot (C, T)

    def _cmax(x):
        if c <= 32:                                      # unrolled VALU reduce
            m = x[0:1, :]
            for k in range(1, c):
                m = jnp.maximum(m, x[k:k + 1, :])
            return m
        return jnp.max(x, axis=0, keepdims=True)

    def _csum(x):
        if c <= 32:
            s = x[0:1, :]
            for k in range(1, c):
                s = s + x[k:k + 1, :]
            return s
        return jnp.sum(x, axis=0, keepdims=True)

    def _softmax_parts(ref):
        x = ref[...].astype(jnp.float32)                 # (C, TILE_P)
        if ragged:
            x = jnp.where(in_bounds, x, 0.0)             # sanitize OOB garbage
        m = _cmax(x)
        ex = jnp.exp(x - m)                              # the ONLY exp pass
        s = _csum(ex)
        neg_logp = (m + jnp.log(s)) - x                  # = -(log-softmax)
        return neg_logp, ex, s

    def _psum(v):                                        # (C, T) -> (C, 1)
        return jnp.sum(v, axis=1, keepdims=True)

    # ---- main head: Dice + label-smoothed CE statistics --------------------
    neg_logp, ex, s = _softmax_parts(logit_refs[0])
    inv_s_masked = vmask / s                             # per-pixel, not per-class
    probs_m = ex * inv_s_masked                          # masked softmax probs
    out_ref[:, 0:1] += _psum(probs_m * onehot_m)         # intersection
    out_ref[:, 1:2] += _psum(probs_m)                    # pred sum
    out_ref[:, 2:3] += _psum(onehot_m)                   # true sum
    out_ref[:, 3:4] += _psum(neg_logp * onehot_m)        # nll sum
    out_ref[:, 4:5] += _psum(neg_logp * vmask)           # smooth sum

    # ---- aux heads: label-smoothed CE statistics only -----------------------
    for a in range(1, n_inputs):
        neg_logp_a, _, _ = _softmax_parts(logit_refs[a])
        base = 5 + 2 * (a - 1)
        out_ref[:, base:base + 1] += _psum(neg_logp_a * onehot_m)
        out_ref[:, base + 1:base + 2] += _psum(neg_logp_a * vmask)


def _choose_tile_pixels(hw, c, n_logit_inputs):
    """Largest lane-multiple pixel tile fitting a conservative VMEM budget."""
    budget = 12 * 1024 * 1024                  # double-buffered input blocks
    bytes_per_pixel = n_logit_inputs * 2 * c * 4 + 2 * 4
    t = budget // bytes_per_pixel
    t = int(max(128, min(t, 32768)))           # cap keeps v7x (64 MiB) happy
    t = (t // 128) * 128
    if hw <= t:
        return hw                              # full-extent block is always legal
    return t


def _compute_stats(logit_list, labels):
    """One pallas_call over all heads; returns ((C, NSTATS) stats, num_pixels)."""
    n, c, h, w = logit_list[0].shape
    hw = h * w
    n_inputs = len(logit_list)
    nstats = 5 + 2 * (n_inputs - 1)

    tile_p = _choose_tile_pixels(hw, c, n_inputs)
    n_tiles = pl.cdiv(hw, tile_p)
    ragged = (hw % tile_p) != 0

    # Free reshapes: NCHW is already class-major with contiguous pixels.
    xs = [x.reshape(n, c, hw) for x in logit_list]
    y = labels.reshape(n, 1, hw).astype(jnp.int32)

    kernel = functools.partial(
        _stats_kernel, hw=hw, tile_p=tile_p, c=c, n_inputs=n_inputs,
        ragged=ragged)

    logit_specs = [
        pl.BlockSpec((None, c, tile_p), lambda b, i: (b, 0, i))
        for _ in range(n_inputs)
    ]
    label_spec = pl.BlockSpec((None, 1, tile_p), lambda b, i: (b, 0, i))
    out_spec = pl.BlockSpec((None, c, nstats), lambda b, i: (b, 0, 0))

    per_batch = pl.pallas_call(
        kernel,
        out_shape=jax.ShapeDtypeStruct((n, c, nstats), jnp.float32),
        grid_spec=pltpu.PrefetchScalarGridSpec(
            num_scalar_prefetch=0,
            grid=(n, n_tiles),
            in_specs=logit_specs + [label_spec],
            out_specs=out_spec,
        ),
        compiler_params=pltpu.CompilerParams(
            dimension_semantics=("parallel", "arbitrary"),
            vmem_limit_bytes=48 * 1024 * 1024,
        ),
    )(*xs, y)

    stats = jnp.sum(per_batch, axis=0)                  # (C, NSTATS)
    return stats, n * hw


def _soft_ce(nll_col, smooth_col, total_pixels, num_classes):
    # label_smoothed_nll_loss with reduction="mean" (mean over ALL pixels,
    # ignored pixels counted as zero — pytorch_toolbelt semantics).
    mean_nll = jnp.sum(nll_col) / total_pixels
    mean_smooth = jnp.sum(smooth_col) / total_pixels
    eps = SMOOTH_FACTOR
    return (1.0 - eps) * mean_nll + (eps / num_classes) * mean_smooth


def _dice(inter, pred_sum, true_sum):
    cardinality = pred_sum + true_sum
    score = (2.0 * inter + DICE_SMOOTH) / jnp.maximum(
        cardinality + DICE_SMOOTH, DICE_EPS)
    # dice loss only counts classes present in the (valid) ground truth
    loss = (1.0 - score) * (true_sum > 0).astype(jnp.float32)
    return jnp.mean(loss)


def unetformer_loss(logits, labels, training=True):
    """Forward pass of UnetFormerLoss.

    logits: either a single (N, C, H, W) array, or a tuple/list
            (logit_main, logit_aux) of two such arrays (training mode).
    labels: (N, H, W) int labels in [0, C) or IGNORE_INDEX (255).
    """
    if training and isinstance(logits, (tuple, list)) and len(logits) == 2:
        logit_main, logit_aux = logits
        c = logit_main.shape[1]
        stats, p = _compute_stats([logit_main, logit_aux], labels)
        main = (_soft_ce(stats[:, 3], stats[:, 4], p, c)
                + _dice(stats[:, 0], stats[:, 1], stats[:, 2]))
        aux = _soft_ce(stats[:, 5], stats[:, 6], p, c)
        return main + 0.4 * aux
    else:
        c = logits.shape[1]
        stats, p = _compute_stats([logits], labels)
        return (_soft_ce(stats[:, 3], stats[:, 4], p, c)
                + _dice(stats[:, 0], stats[:, 1], stats[:, 2]))


if __name__ == "__main__":
    key = jax.random.PRNGKey(0)
    k1, k2, k3, k4 = jax.random.split(key, 4)
    N, C, H, W = 2, 4, 16, 16

    logit_main = jax.random.normal(k1, (N, C, H, W), dtype=jnp.float32)
    logit_aux = jax.random.normal(k2, (N, C, H, W), dtype=jnp.float32)
    labels = jax.random.randint(k3, (N, H, W), 0, C, dtype=jnp.int32)
    # sprinkle some ignore_index pixels
    ignore_mask = jax.random.uniform(k4, (N, H, W)) < 0.1
    labels = jnp.where(ignore_mask, IGNORE_INDEX, labels)

    # training path: main (SoftCE + Dice) + 0.4 * aux SoftCE, single fused kernel
    loss_train = unetformer_loss((logit_main, logit_aux), labels, training=True)
    # eval path: main loss only
    loss_eval = unetformer_loss(logit_main, labels, training=False)

    jax.block_until_ready((loss_train, loss_eval))
    print("KERNEL_OK")
</pallas_src>

<mosaic_0001>
module attributes {stable_mosaic.version = 11 : i64} {
  func.func @_stats_kernel(%arg0: i32, %arg1: i32, %arg2: memref<1x4x256xf32, #tpu.memory_space<vmem>>, %arg3: memref<1x4x256xf32, #tpu.memory_space<vmem>>, %arg4: memref<1x1x256xi32, #tpu.memory_space<vmem>>, %arg5: memref<1x4x7xf32, #tpu.memory_space<vmem>>) attributes {dimension_semantics = [#tpu.dimension_semantics<parallel>, #tpu.dimension_semantics<arbitrary>], iteration_bounds = array<i64: 2, 1>, scalar_prefetch = 0 : i64, scratch_operands = 0 : i64, tpu.core_type = #tpu.core_type<tc>, window_params = [{transform_indices = @transform_0, window_bounds = array<i64: 1, 4, 256>}, {transform_indices = @transform_1, window_bounds = array<i64: 1, 4, 256>}, {transform_indices = @transform_2, window_bounds = array<i64: 1, 1, 256>}, {transform_indices = @transform_3, window_bounds = array<i64: 1, 4, 7>}]} {
    %c0_i32 = arith.constant 0 : i32
    %0 = arith.cmpi eq, %arg1, %c0_i32 : i32
    %1 = arith.extui %0 : i1 to i32
    %c0_i32_0 = arith.constant 0 : i32
    %2 = arith.cmpi ne, %1, %c0_i32_0 : i32
    scf.if %2 {
      %cst_52 = arith.constant 0.000000e+00 : f32
      %128 = vector.broadcast %cst_52 : f32 to vector<4x7xf32>
      %c0_53 = arith.constant 0 : index
      %c0_54 = arith.constant 0 : index
      %c0_55 = arith.constant 0 : index
      %129 = vector.load %arg5[%c0_53, %c0_54, %c0_55] : memref<1x4x7xf32, #tpu.memory_space<vmem>>, vector<1x4x7xf32>
      %130 = vector.shape_cast %129 : vector<1x4x7xf32> to vector<4x7xf32>
      %131 = vector.shape_cast %128 : vector<4x7xf32> to vector<1x4x7xf32>
      tpu.vector_store %arg5[%c0_53, %c0_54, %c0_55], %131 {strides = array<i32>} : memref<1x4x7xf32, #tpu.memory_space<vmem>>, vector<1x4x7xf32>,
    } else {
    }
    %c0 = arith.constant 0 : index
    %c0_1 = arith.constant 0 : index
    %c0_2 = arith.constant 0 : index
    %3 = vector.load %arg4[%c0, %c0_1, %c0_2] : memref<1x1x256xi32, #tpu.memory_space<vmem>>, vector<1x1x256xi32>
    %4 = vector.shape_cast %3 : vector<1x1x256xi32> to vector<1x256xi32>
    %c255_i32 = arith.constant 255 : i32
    %5 = vector.broadcast %c255_i32 : i32 to vector<1x256xi32>
    %6 = arith.cmpi ne, %4, %5 : vector<1x256xi32>
    %7 = arith.extui %6 : vector<1x256xi1> to vector<1x256xi32>
    %8 = arith.sitofp %7 : vector<1x256xi32> to vector<1x256xf32>
    %9 = tpu.iota {dimensions = array<i32: 0>} : vector<4x256xi32>
    %10 = vector.broadcast %4 : vector<1x256xi32> to vector<4x256xi32>
    %11 = arith.cmpi eq, %9, %10 : vector<4x256xi32>
    %cst = arith.constant 0.000000e+00 : f32
    %12 = vector.shape_cast %8 : vector<1x256xf32> to vector<1x256xf32>
    %13 = vector.broadcast %12 : vector<1x256xf32> to vector<4x256xf32>
    %14 = vector.broadcast %cst : f32 to vector<4x256xf32>
    %15 = arith.select %11, %13, %14 : vector<4x256xi1>, vector<4x256xf32>
    %c0_3 = arith.constant 0 : index
    %c0_4 = arith.constant 0 : index
    %c0_5 = arith.constant 0 : index
    %16 = vector.load %arg2[%c0_3, %c0_4, %c0_5] : memref<1x4x256xf32, #tpu.memory_space<vmem>>, vector<1x4x256xf32>
    %17 = vector.shape_cast %16 : vector<1x4x256xf32> to vector<4x256xf32>
    %18 = vector.extract_strided_slice %17 {offsets = [0, 0], sizes = [1, 256], strides = [1, 1]} : vector<4x256xf32> to vector<1x256xf32>
    %19 = vector.extract_strided_slice %17 {offsets = [1, 0], sizes = [1, 256], strides = [1, 1]} : vector<4x256xf32> to vector<1x256xf32>
    %20 = arith.maximumf %18, %19 : vector<1x256xf32>
    %21 = vector.extract_strided_slice %17 {offsets = [2, 0], sizes = [1, 256], strides = [1, 1]} : vector<4x256xf32> to vector<1x256xf32>
    %22 = arith.maximumf %20, %21 : vector<1x256xf32>
    %23 = vector.extract_strided_slice %17 {offsets = [3, 0], sizes = [1, 256], strides = [1, 1]} : vector<4x256xf32> to vector<1x256xf32>
    %24 = arith.maximumf %22, %23 : vector<1x256xf32>
    %25 = vector.broadcast %24 : vector<1x256xf32> to vector<4x256xf32>
    %26 = arith.subf %17, %25 : vector<4x256xf32>
    %27 = math.exp %26 : vector<4x256xf32>
    %28 = vector.extract_strided_slice %27 {offsets = [0, 0], sizes = [1, 256], strides = [1, 1]} : vector<4x256xf32> to vector<1x256xf32>
    %29 = vector.extract_strided_slice %27 {offsets = [1, 0], sizes = [1, 256], strides = [1, 1]} : vector<4x256xf32> to vector<1x256xf32>
    %30 = arith.addf %28, %29 : vector<1x256xf32>
    %31 = vector.extract_strided_slice %27 {offsets = [2, 0], sizes = [1, 256], strides = [1, 1]} : vector<4x256xf32> to vector<1x256xf32>
    %32 = arith.addf %30, %31 : vector<1x256xf32>
    %33 = vector.extract_strided_slice %27 {offsets = [3, 0], sizes = [1, 256], strides = [1, 1]} : vector<4x256xf32> to vector<1x256xf32>
    %34 = arith.addf %32, %33 : vector<1x256xf32>
    %35 = math.log %34 : vector<1x256xf32>
    %36 = arith.addf %24, %35 : vector<1x256xf32>
    %37 = vector.broadcast %36 : vector<1x256xf32> to vector<4x256xf32>
    %38 = arith.subf %37, %17 : vector<4x256xf32>
    %39 = arith.divf %8, %34 : vector<1x256xf32>
    %40 = vector.broadcast %39 : vector<1x256xf32> to vector<4x256xf32>
    %41 = arith.mulf %27, %40 : vector<4x256xf32>
    %c0_6 = arith.constant 0 : index
    %c0_7 = arith.constant 0 : index
    %c0_8 = arith.constant 0 : index
    %42 = vector.load %arg5[%c0_6, %c0_7, %c0_8] : memref<1x4x7xf32, #tpu.memory_space<vmem>>, vector<1x4x1xf32>
    %43 = vector.shape_cast %42 : vector<1x4x1xf32> to vector<4x1xf32>
    %44 = arith.mulf %41, %15 : vector<4x256xf32>
    %cst_9 = arith.constant dense<0.000000e+00> : vector<4xf32>
    %45 = vector.multi_reduction <add>, %44, %cst_9 [1] : vector<4x256xf32> to vector<4xf32>
    %46 = vector.shape_cast %45 : vector<4xf32> to vector<4x1xf32>
    %47 = arith.addf %43, %46 : vector<4x1xf32>
    %c0_10 = arith.constant 0 : index
    %c0_11 = arith.constant 0 : index
    %c0_12 = arith.constant 0 : index
    %48 = vector.load %arg5[%c0_10, %c0_11, %c0_12] : memref<1x4x7xf32, #tpu.memory_space<vmem>>, vector<1x4x1xf32>
    %49 = vector.shape_cast %48 : vector<1x4x1xf32> to vector<4x1xf32>
    %50 = vector.shape_cast %47 : vector<4x1xf32> to vector<1x4x1xf32>
    tpu.vector_store %arg5[%c0_10, %c0_11, %c0_12], %50 {strides = array<i32>} : memref<1x4x7xf32, #tpu.memory_space<vmem>>, vector<1x4x1xf32>,
    %c0_13 = arith.constant 0 : index
    %c0_14 = arith.constant 0 : index
    %c1 = arith.constant 1 : index
    %51 = vector.load %arg5[%c0_13, %c0_14, %c1] : memref<1x4x7xf32, #tpu.memory_space<vmem>>, vector<1x4x1xf32>
    %52 = vector.shape_cast %51 : vector<1x4x1xf32> to vector<4x1xf32>
    %cst_15 = arith.constant dense<0.000000e+00> : vector<4xf32>
    %53 = vector.multi_reduction <add>, %41, %cst_15 [1] : vector<4x256xf32> to vector<4xf32>
    %54 = vector.shape_cast %53 : vector<4xf32> to vector<4x1xf32>
    %55 = arith.addf %52, %54 : vector<4x1xf32>
    %c0_16 = arith.constant 0 : index
    %c0_17 = arith.constant 0 : index
    %c1_18 = arith.constant 1 : index
    %56 = vector.load %arg5[%c0_16, %c0_17, %c1_18] : memref<1x4x7xf32, #tpu.memory_space<vmem>>, vector<1x4x1xf32>
    %57 = vector.shape_cast %56 : vector<1x4x1xf32> to vector<4x1xf32>
    %58 = vector.shape_cast %55 : vector<4x1xf32> to vector<1x4x1xf32>
    tpu.vector_store %arg5[%c0_16, %c0_17, %c1_18], %58 {strides = array<i32>} : memref<1x4x7xf32, #tpu.memory_space<vmem>>, vector<1x4x1xf32>,
    %c0_19 = arith.constant 0 : index
    %c0_20 = arith.constant 0 : index
    %c2 = arith.constant 2 : index
    %59 = vector.load %arg5[%c0_19, %c0_20, %c2] : memref<1x4x7xf32, #tpu.memory_space<vmem>>, vector<1x4x1xf32>
    %60 = vector.shape_cast %59 : vector<1x4x1xf32> to vector<4x1xf32>
    %cst_21 = arith.constant dense<0.000000e+00> : vector<4xf32>
    %61 = vector.multi_reduction <add>, %15, %cst_21 [1] : vector<4x256xf32> to vector<4xf32>
    %62 = vector.shape_cast %61 : vector<4xf32> to vector<4x1xf32>
    %63 = arith.addf %60, %62 : vector<4x1xf32>
    %c0_22 = arith.constant 0 : index
    %c0_23 = arith.constant 0 : index
    %c2_24 = arith.constant 2 : index
    %64 = vector.load %arg5[%c0_22, %c0_23, %c2_24] : memref<1x4x7xf32, #tpu.memory_space<vmem>>, vector<1x4x1xf32>
    %65 = vector.shape_cast %64 : vector<1x4x1xf32> to vector<4x1xf32>
    %66 = vector.shape_cast %63 : vector<4x1xf32> to vector<1x4x1xf32>
    tpu.vector_store %arg5[%c0_22, %c0_23, %c2_24], %66 {strides = array<i32>} : memref<1x4x7xf32, #tpu.memory_space<vmem>>, vector<1x4x1xf32>,
    %c0_25 = arith.constant 0 : index
    %c0_26 = arith.constant 0 : index
    %c3 = arith.constant 3 : index
    %67 = vector.load %arg5[%c0_25, %c0_26, %c3] : memref<1x4x7xf32, #tpu.memory_space<vmem>>, vector<1x4x1xf32>
    %68 = vector.shape_cast %67 : vector<1x4x1xf32> to vector<4x1xf32>
    %69 = arith.mulf %38, %15 : vector<4x256xf32>
    %cst_27 = arith.constant dense<0.000000e+00> : vector<4xf32>
    %70 = vector.multi_reduction <add>, %69, %cst_27 [1] : vector<4x256xf32> to vector<4xf32>
    %71 = vector.shape_cast %70 : vector<4xf32> to vector<4x1xf32>
    %72 = arith.addf %68, %71 : vector<4x1xf32>
    %c0_28 = arith.constant 0 : index
    %c0_29 = arith.constant 0 : index
    %c3_30 = arith.constant 3 : index
    %73 = vector.load %arg5[%c0_28, %c0_29, %c3_30] : memref<1x4x7xf32, #tpu.memory_space<vmem>>, vector<1x4x1xf32>
    %74 = vector.shape_cast %73 : vector<1x4x1xf32> to vector<4x1xf32>
    %75 = vector.shape_cast %72 : vector<4x1xf32> to vector<1x4x1xf32>
    tpu.vector_store %arg5[%c0_28, %c0_29, %c3_30], %75 {strides = array<i32>} : memref<1x4x7xf32, #tpu.memory_space<vmem>>, vector<1x4x1xf32>,
    %c0_31 = arith.constant 0 : index
    %c0_32 = arith.constant 0 : index
    %c4 = arith.constant 4 : index
    %76 = vector.load %arg5[%c0_31, %c0_32, %c4] : memref<1x4x7xf32, #tpu.memory_space<vmem>>, vector<1x4x1xf32>
    %77 = vector.shape_cast %76 : vector<1x4x1xf32> to vector<4x1xf32>
    %78 = vector.broadcast %8 : vector<1x256xf32> to vector<4x256xf32>
    %79 = arith.mulf %38, %78 : vector<4x256xf32>
    %cst_33 = arith.constant dense<0.000000e+00> : vector<4xf32>
    %80 = vector.multi_reduction <add>, %79, %cst_33 [1] : vector<4x256xf32> to vector<4xf32>
    %81 = vector.shape_cast %80 : vector<4xf32> to vector<4x1xf32>
    %82 = arith.addf %77, %81 : vector<4x1xf32>
    %c0_34 = arith.constant 0 : index
    %c0_35 = arith.constant 0 : index
    %c4_36 = arith.constant 4 : index
    %83 = vector.load %arg5[%c0_34, %c0_35, %c4_36] : memref<1x4x7xf32, #tpu.memory_space<vmem>>, vector<1x4x1xf32>
    %84 = vector.shape_cast %83 : vector<1x4x1xf32> to vector<4x1xf32>
    %85 = vector.shape_cast %82 : vector<4x1xf32> to vector<1x4x1xf32>
    tpu.vector_store %arg5[%c0_34, %c0_35, %c4_36], %85 {strides = array<i32>} : memref<1x4x7xf32, #tpu.memory_space<vmem>>, vector<1x4x1xf32>,
    %c0_37 = arith.constant 0 : index
    %c0_38 = arith.constant 0 : index
    %c0_39 = arith.constant 0 : index
    %86 = vector.load %arg3[%c0_37, %c0_38, %c0_39] : memref<1x4x256xf32, #tpu.memory_space<vmem>>, vector<1x4x256xf32>
    %87 = vector.shape_cast %86 : vector<1x4x256xf32> to vector<4x256xf32>
    %88 = vector.extract_strided_slice %87 {offsets = [0, 0], sizes = [1, 256], strides = [1, 1]} : vector<4x256xf32> to vector<1x256xf32>
    %89 = vector.extract_strided_slice %87 {offsets = [1, 0], sizes = [1, 256], strides = [1, 1]} : vector<4x256xf32> to vector<1x256xf32>
    %90 = arith.maximumf %88, %89 : vector<1x256xf32>
    %91 = vector.extract_strided_slice %87 {offsets = [2, 0], sizes = [1, 256], strides = [1, 1]} : vector<4x256xf32> to vector<1x256xf32>
    %92 = arith.maximumf %90, %91 : vector<1x256xf32>
    %93 = vector.extract_strided_slice %87 {offsets = [3, 0], sizes = [1, 256], strides = [1, 1]} : vector<4x256xf32> to vector<1x256xf32>
    %94 = arith.maximumf %92, %93 : vector<1x256xf32>
    %95 = vector.broadcast %94 : vector<1x256xf32> to vector<4x256xf32>
    %96 = arith.subf %87, %95 : vector<4x256xf32>
    %97 = math.exp %96 : vector<4x256xf32>
    %98 = vector.extract_strided_slice %97 {offsets = [0, 0], sizes = [1, 256], strides = [1, 1]} : vector<4x256xf32> to vector<1x256xf32>
    %99 = vector.extract_strided_slice %97 {offsets = [1, 0], sizes = [1, 256], strides = [1, 1]} : vector<4x256xf32> to vector<1x256xf32>
    %100 = arith.addf %98, %99 : vector<1x256xf32>
    %101 = vector.extract_strided_slice %97 {offsets = [2, 0], sizes = [1, 256], strides = [1, 1]} : vector<4x256xf32> to vector<1x256xf32>
    %102 = arith.addf %100, %101 : vector<1x256xf32>
    %103 = vector.extract_strided_slice %97 {offsets = [3, 0], sizes = [1, 256], strides = [1, 1]} : vector<4x256xf32> to vector<1x256xf32>
    %104 = arith.addf %102, %103 : vector<1x256xf32>
    %105 = math.log %104 : vector<1x256xf32>
    %106 = arith.addf %94, %105 : vector<1x256xf32>
    %107 = vector.broadcast %106 : vector<1x256xf32> to vector<4x256xf32>
    %108 = arith.subf %107, %87 : vector<4x256xf32>
    %c0_40 = arith.constant 0 : index
    %c0_41 = arith.constant 0 : index
    %c5 = arith.constant 5 : index
    %109 = vector.load %arg5[%c0_40, %c0_41, %c5] : memref<1x4x7xf32, #tpu.memory_space<vmem>>, vector<1x4x1xf32>
    %110 = vector.shape_cast %109 : vector<1x4x1xf32> to vector<4x1xf32>
    %111 = arith.mulf %108, %15 : vector<4x256xf32>
    %cst_42 = arith.constant dense<0.000000e+00> : vector<4xf32>
    %112 = vector.multi_reduction <add>, %111, %cst_42 [1] : vector<4x256xf32> to vector<4xf32>
    %113 = vector.shape_cast %112 : vector<4xf32> to vector<4x1xf32>
    %114 = arith.addf %110, %113 : vector<4x1xf32>
    %c0_43 = arith.constant 0 : index
    %c0_44 = arith.constant 0 : index
    %c5_45 = arith.constant 5 : index
    %115 = vector.load %arg5[%c0_43, %c0_44, %c5_45] : memref<1x4x7xf32, #tpu.memory_space<vmem>>, vector<1x4x1xf32>
    %116 = vector.shape_cast %115 : vector<1x4x1xf32> to vector<4x1xf32>
    %117 = vector.shape_cast %114 : vector<4x1xf32> to vector<1x4x1xf32>
    tpu.vector_store %arg5[%c0_43, %c0_44, %c5_45], %117 {strides = array<i32>} : memref<1x4x7xf32, #tpu.memory_space<vmem>>, vector<1x4x1xf32>,
    %c0_46 = arith.constant 0 : index
    %c0_47 = arith.constant 0 : index
    %c6 = arith.constant 6 : index
    %118 = vector.load %arg5[%c0_46, %c0_47, %c6] : memref<1x4x7xf32, #tpu.memory_space<vmem>>, vector<1x4x1xf32>
    %119 = vector.shape_cast %118 : vector<1x4x1xf32> to vector<4x1xf32>
    %120 = vector.broadcast %8 : vector<1x256xf32> to vector<4x256xf32>
    %121 = arith.mulf %108, %120 : vector<4x256xf32>
    %cst_48 = arith.constant dense<0.000000e+00> : vector<4xf32>
    %122 = vector.multi_reduction <add>, %121, %cst_48 [1] : vector<4x256xf32> to vector<4xf32>
    %123 = vector.shape_cast %122 : vector<4xf32> to vector<4x1xf32>
    %124 = arith.addf %119, %123 : vector<4x1xf32>
    %c0_49 = arith.constant 0 : index
    %c0_50 = arith.constant 0 : index
    %c6_51 = arith.constant 6 : index
    %125 = vector.load %arg5[%c0_49, %c0_50, %c6_51] : memref<1x4x7xf32, #tpu.memory_space<vmem>>, vector<1x4x1xf32>
    %126 = vector.shape_cast %125 : vector<1x4x1xf32> to vector<4x1xf32>
    %127 = vector.shape_cast %124 : vector<4x1xf32> to vector<1x4x1xf32>
    tpu.vector_store %arg5[%c0_49, %c0_50, %c6_51], %127 {strides = array<i32>} : memref<1x4x7xf32, #tpu.memory_space<vmem>>, vector<1x4x1xf32>,
    return
  }
  func.func @transform_0(%arg0: i32, %arg1: i32) -> (i32, i32, i32) {
    %c0_i32 = arith.constant 0 : i32
    %c0_i32_0 = arith.constant 0 : i32
    return %arg0, %c0_i32, %arg1 : i32, i32, i32
  }
  func.func @transform_1(%arg0: i32, %arg1: i32) -> (i32, i32, i32) {
    %c0_i32 = arith.constant 0 : i32
    %c0_i32_0 = arith.constant 0 : i32
    return %arg0, %c0_i32, %arg1 : i32, i32, i32
  }
  func.func @transform_2(%arg0: i32, %arg1: i32) -> (i32, i32, i32) {
    %c0_i32 = arith.constant 0 : i32
    %c0_i32_0 = arith.constant 0 : i32
    return %arg0, %c0_i32, %arg1 : i32, i32, i32
  }
  func.func @transform_3(%arg0: i32, %arg1: i32) -> (i32, i32, i32) {
    %c0_i32 = arith.constant 0 : i32
    %c0_i32_0 = arith.constant 0 : i32
    %c0_i32_1 = arith.constant 0 : i32
    return %arg0, %c0_i32, %c0_i32_0 : i32, i32, i32
  }
}

</mosaic_0001>

<bundles_post_ra>
// kernel: tpu_custom_call.1
= control target key start
LH: loop header
LB: loop body
LE: loop exit
PB: predicated region body
PF: predicated region fallthrough
CT: control target
= control target key end

     0   :  { %8 = vsyncpa [#allocation3], 0  ;;  %s1350_s0 = inlined_call_operand.hbm [shape: f32[2,4,256], index: 0, kind: input, shape index: {}]   ;;  %s1351_s1 = inlined_call_operand.hbm [shape: f32[2,4,256], index: 1, kind: input, shape index: {}]   ;;  %s1352_s2 = inlined_call_operand.vmem [shape: s32[2,1,256], index: 2, kind: input, shape index: {}]   ;;  %s1353_s3 = inlined_call_operand.hbm [shape: f32[2,4,7], index: 3, kind: output, shape index: {}]  }
   0x1   :  { %10 = vsyncpa [#allocation3 + $0x1], 0 }
   0x2   :  { %11 = vsyncpa [#allocation6], 0 }
   0x3   :  { %13 = vsyncpa [#allocation6 + $0x1], 0 }
   0x4   :  { %14 = vsyncpa [#allocation4], 0 }
   0x5   :  { %16 = vsyncpa [#allocation4 + $0x1], 0  ;;  %s1009_s12 = smov 0   ;;  %s1011_s13 = smov 0  }
   0x6   :  { %s1013_s14 = smov 0   ;;  %s1015_s15 = smov 0  }
   0x7   :  { %s1017_s16 = smov 0   ;;  %s1019_s17 = smov 0  }
   0x8 LB: > { %s722_s18 = sadd.s32 4294967295, %s982_s17   ;;  %s723_s19 = sadd.s32 4294967294, %s982_s17   ;;  %s982_s17 = sphi %s1019_s17, %s22_s17   ;;  %s978_s16 = sphi %s1017_s16, %s1373_s16   ;;  %s974_s15 = sphi %s1015_s15, %s1372_s15   ;;  %s970_s14 = sphi %s1013_s14, %s1371_s14   ;;  %s966_s13 = sphi %s1011_s13, %s1370_s13   ;;  %s962_s12 = sphi %s1009_s12, %s1369_s12  }
   0x9   : > { %s34_s20 = sadd.s32 1, %s978_s16  ;;  %s43_s21 = sadd.s32 1, %s970_s14 }
   0xa   : > { %p36_p0 = scmp.ge.s32.totalorder %s34_s20, 2  ;;  %p50_p1 = scmp.ne.s32.totalorder %s970_s14, %s966_s13 }
   0xb   : > { %p51_p2 = scmp.eq.s32.totalorder %s982_s17, 0  ;;  %p56_p3 = scmp.ne.s32.totalorder %s966_s13, %s962_s12 }
   0xc   : > { %s1375_s20 = smov (%p36_p0, %s34_s20), 0  ;;  %p57_p5 = scmp.eq.s32.totalorder %s722_s18, 0 }
   0xd   : > { %p1050_p4 = por %p51_p2, %p50_p1  ;;  %s38_s23 = ssub.s32 %s978_s16, %s1375_s20 }
   0xe   : > { %p136_p6 = scmp.eq.s32.totalorder %s722_s18, 1  ;;  %p41_p7 = scmp.eq.s32.totalorder %s38_s23, 0 }
   0xf   : > { %p1056_p8 = por %p57_p5, %p56_p3  ;;  %p142_p10 = scmp.eq.s32.totalorder %s723_s19, 1 }
  0x10   : > { %p1060_p9 = por %p136_p6, %p50_p1  ;;  %p773_p13 = scmp.lt.s32.totalorder %s982_s17, 2 }
  0x11   : > { %s1357_s24 = scalar_select %p1056_p8, 1, 0 }
  0x12   : > { %s1358_s25 = scalar_select %p1060_p9, 1, 0 }
  0x13   : > { %s1065_s26 = scalar_select %p41_p7, %s970_s14, %s43_s21  }
  0x14   : > { %p1067_p11 = por %p142_p10, %p56_p3  ;;  %s1074_s28 = sand.u32 1, %s970_s14  }
  0x15   : > { %s726_s29 = sshll.u32 %s1074_s28, 3  ;;  %s754_s30 = sshll.u32 %s978_s16, 7 }
  0x16   : > { %s1359_s27 = scalar_select %p1067_p11, 1, 0 }
  0x17   : > { %s1083_s6 = scalar_lea.hbm %s1350_s0, %s754_s30  ;;  %s166_s7 = scalar_lea.vmem [#allocation2], %s726_s29 }
  0x18   : > { %s176_s8 = sshll.u32 %s166_s7, 4  ;;  %p1091_p0 = pnand %p773_p13, %p1050_p4  ;;  %s1087_s8 = int_to_ptr.vmem [resolvable:$true] %s176_s8 }
  0x19   : > { %s163_s10 = scalar_lea.sflag [#allocation3], %s1074_s28  ;;  %s836_s11 = scalar_lea.hbm %s1083_s6, 128 }
  0x1a   : > { %p837_p3 = scmp.ne.s32.totalorder %s1083_s6, %s836_s11  ;;  %p838_p5 = pneg %p1091_p0 }
  0x1b   : > { %s841_s21 = scalar_lea.hbm %s1350_s0, 256  ;;  %p842_p4 = scmp.lt.u32.totalorder %s1083_s6, %s1350_s0 }
  0x1c   : > { %p839_p6 = pnand %p838_p5, %p837_p3  ;;  %p843_p10 = scmp.lt.u32.totalorder %s841_s21, %s836_s11 }
  0x1d   : > { %p845_p12 = scmp.lt.u32.totalorder %s836_s11, %s1083_s6 }
  0x1e   : > { %p840_p7 = pneg %p839_p6  ;;  %p844_p13 = por %p843_p10, %p842_p4 }
  0x20   : > { %p846_p1 = por %p845_p12, %p844_p13 }
  0x22   : > { %p847_p2 = pnand %p846_p1, %p840_p7 }
  0x24   : > { %850 = shalt.err (!%p847_p2)
}
  0x25   : > { %s851_s4 = scalar_lea.vmem %s1087_s8, 128  ;;  %s984_s5 = smov [#allocation2]  }
  0x26   : > { %p852_p3 = scmp.ne.s32.totalorder %s1087_s8, %s851_s4  ;;  %s856_s7 = sshll.u32 %s984_s5, 4  ;;  %s857_s7 = int_to_ptr.vmem [resolvable:$false] %s856_s7 }
  0x27   : > { %s858_s18 = scalar_lea.vmem %s857_s7, 256  ;;  %p859_p9 = scmp.lt.s32.totalorder %s1087_s8, %s857_s7 }
  0x28   : > { %p854_p6 = pnand %p852_p3, %p838_p5  ;;  %p860_p4 = scmp.lt.s32.totalorder %s858_s18, %s851_s4 }
  0x2a   : > { %p855_p11 = pneg %p854_p6  ;;  %p861_p10 = por %p860_p4, %p859_p9 }
  0x2c   : > { %p862_p12 = pnand %p861_p10, %p855_p11 }
  0x2e   : > { %865 = shalt.err (!%p862_p12)
}
  0x2f   : > { %765 = dma.hbm_to_vmem [thread:$0]  (!%p1091_p0), %s1083_s6, 128, %s1087_s8, %s163_s10  }
  0x30   : > { %p1361_p1 = scmp.lt.s32.totalorder %s982_s17, 3  ;;  %p1362_p2 = scmp.ge.s32.totalorder %s982_s17, 1 }
  0x31   : > { %s1136_s22 = scalar_lea.hbm %s1351_s1, %s754_s30  ;;  %s187_s23 = scalar_lea.vmem [#allocation5], %s726_s29 }
  0x32   : > { %p1127_p7 = pnand %p1362_p2, %p1361_p1  ;;  %s197_s4 = sshll.u32 %s187_s23, 4  ;;  %s198_s4 = int_to_ptr.vmem [resolvable:$true] %s197_s4 }
  0x33   : > { %s184_s6 = scalar_lea.sflag [#allocation6], %s1074_s28  ;;  %s866_s8 = scalar_lea.hbm %s1136_s22, 128 }
  0x34   : > { %s1363_s11 = scalar_select %p1127_p7, 1, 0 }
  0x35   : > { %p867_p9 = scmp.ne.s32.totalorder %s1136_s22, %s866_s8  ;;  %s871_s30 = scalar_lea.hbm %s1351_s1, 256 }
  0x36   : > { %p872_p3 = scmp.lt.u32.totalorder %s1136_s22, %s1351_s1  ;;  %p873_p6 = scmp.lt.u32.totalorder %s871_s30, %s866_s8 }
  0x37   : > { %p869_p11 = pnand %p867_p9, %p838_p5  ;;  %p875_p10 = scmp.lt.u32.totalorder %s866_s8, %s1136_s22 }
  0x38   : > { %p874_p4 = por %p873_p6, %p872_p3 }
  0x39   : > { %p870_p13 = pneg %p869_p11 }
  0x3a   : > { %p876_p12 = por %p875_p10, %p874_p4 }
  0x3c   : > { %p877_p1 = pnand %p876_p12, %p870_p13 }
  0x3e   : > { %880 = shalt.err (!%p877_p1)
}
  0x3f   : > { %s881_s28 = scalar_lea.vmem %s198_s4, 128  ;;  %s985_s29 = smov [#allocation5]  }
  0x40   : > { %p882_p2 = scmp.ne.s32.totalorder %s198_s4, %s881_s28  ;;  %s886_s19 = sshll.u32 %s985_s29, 4  ;;  %s887_s19 = int_to_ptr.vmem [resolvable:$false] %s886_s19 }
  0x41   : > { %s888_s21 = scalar_lea.vmem %s887_s19, 256  ;;  %p889_p8 = scmp.lt.s32.totalorder %s198_s4, %s887_s19 }
  0x42   : > { %p884_p9 = pnand %p882_p2, %p838_p5  ;;  %p890_p7 = scmp.lt.s32.totalorder %s888_s21, %s881_s28 }
  0x44   : > { %p885_p11 = pneg %p884_p9  ;;  %p891_p3 = por %p890_p7, %p889_p8 }
  0x46   : > { %p892_p6 = pnand %p891_p3, %p885_p11 }
  0x48   : > { %895 = shalt.err (!%p892_p6)
}
  0x49   : > { %768 = dma.hbm_to_vmem [thread:$0]  (!%p1091_p0), %s1136_s22, 128, %s198_s4, %s184_s6  }
  0x4a   : > { %p1364_p13 = scmp.ne.s32.totalorder %s1363_s11, 0 }
  0x4b   : > { %s1163_s23 = sand.u32 (!%p1364_p13), 1, %s966_s13   ;;  %p1365_p5 = scmp.ne.s32.totalorder (!%p1364_p13), %s1357_s24, 0 }
  0x4c   : > { %218 = sbr.rel (%p1364_p13) target bundleno = 373 (0x175), region = 32  ;;  %s733_s8 = sshll.u32 (!%p1364_p13), %s1163_s23, 3 }
  0x4d   : > { %s221_s10 = scalar_lea.sflag (!%p1364_p13), [#allocation3], %s1163_s23  ;;  %s224_s5 = scalar_lea.vmem (!%p1364_p13), [#allocation2], %s733_s8 }
  0x53   : > { %949 = dma.done.wait (%p1365_p5), %s221_s10, 128  }
  0x54   : > { %951 = vsyncadd (%p1365_p5), %s221_s10, 4294967168  ;;  %s230_s9 = scalar_lea.sflag [#allocation6], %s1163_s23  ;;  %s233_s22 = scalar_lea.vmem [#allocation5], %s733_s8 }
  0x55   : > { %953 = dma.done.wait (%p1365_p5), %s230_s9, 128  }
  0x56   : > { %955 = vsyncadd (%p1365_p5), %s230_s9, 4294967168  ;;  %s735_s11 = sshll.u32 %s1163_s23, 2  ;;  %p272_p8 = scmp.lt.s32.totalorder %s974_s15, 1  ;;  %vm284_vm0 = vcmask 52224   ;;  %v290_v0 = vlaneseq  ;;  %v986_v2 = vmov 0.0   ;;  %v1193_v6 = vld [vmem:[%s224_s5] sm:$0xff] }
  0x57   : > { %s1181_s6 = scalar_lea.vmem [#allocation7], %s735_s11  ;;  %v738_v9 = vrot.slane %v1193_v6, 9  ;;  %v1198_v10 = vld [vmem:[%s233_s22] sm:$0xff]  ;;  %v739_v12 = vrot.slane %v1193_v6, 10  ;;  %v740_v16 = vrot.slane %v1193_v6, 11  ;;  %vm433_vm4 = vcmask 1043456  }
  0x58   : > { %s273_s4 = scalar_select %p272_p8, %s974_s15, 1  ;;  %v1179_v1 = vshrl.u32 %v290_v0, 7  ;;  %285 = vst.msk [vmem:[%s1181_s6] sm:$0xf] %vm284_vm0, %v986_v2  ;;  %v744_v17 = vrot.slane %v1198_v10, 9  ;;  %v745_v20 = vrot.slane %v1198_v10, 10 }
  0x59   : > { %v320_v15 = vmax.f32 %v1193_v6, %v738_v9  ;;  %v746_v27 = vrot.slane %v1198_v10, 11  ;;  %v987_v45 = vmov 1966171168   ;;  %vm440_vm5 = vcmask 3072   ;;  %s751_s28 = sshll.u32 %s974_s15, 6  ;;  %s600_s29 = sshll.u32 %s1181_s6, 4  ;;  %s1302_s29 = int_to_ptr.vmem [resolvable:$true] %s600_s29 }
  0x5a   : > { %s736_s30 = sshll.u32 %s273_s4, 1  ;;  %v1185_v3 = vsub.s32 1, %v1179_v1  ;;  %v1191_v4 = vsub.s32 0, %v1179_v1  ;;  %v1224_v22 = vsub.s32 4, %v1179_v1  ;;  %v490_v26 = vmax.f32 %v1198_v10, %v744_v17  ;;  %s1300_s8 = scalar_lea.hbm %s1353_s3, %s751_s28 }
  0x5b   : > { %s278_s18 = scalar_lea.vmem %s1352_s2, %s736_s30  ;;  %v324_v21 = vmax.f32 %v320_v15, %v739_v12  ;;  %v396_v46 = vunpack.c.l.s4 %v987_v45  ;;  %v390_v17 = vcombine.high %v1193_v6, %v1193_v6  ;;  %vm452_vm6 = vcmask 11272   ;;  %s587_s10 = scalar_lea.sflag [#allocation4], %s1163_s23 }
  0x5c   : > { %v286_v5 = vld [vmem:[%s278_s18] sm:$0x3]  ;;  %v494_v29 = vmax.f32 %v490_v26, %v745_v20  ;;  %vm461_vm7 = vcmask 19472   ;;  %vm472_vm8 = vcmask 27672   ;;  %vm483_vm9 = vcmask 35872   ;;  %s896_s5 = scalar_lea.vmem %s1302_s29, 64 }
  0x5d   : > { %vm287_vm1 = vcmp.ne.s32.totalorder %v286_v5, 255  ;;  %v295_v7 = vrot.slane %v286_v5, %v1191_v4  ;;  %v299_v8 = vrot.slane %v286_v5, %v1185_v3  ;;  %v328_v28 = vmax.f32 %v324_v21, %v740_v16  ;;  %p897_p0 = scmp.ne.s32.totalorder %s1302_s29, %s896_s5  ;;  %p1366_p7 = scmp.ne.s32.totalorder %s1358_s25, 0 }
  0x5e   : > { %v1200_v11 = vsel %vm287_vm1, 1.0, %v986_v2  ;;  %v498_v32 = vmax.f32 %v494_v29, %v746_v27  ;;  %v397_v50 = vunpack.c.0.s8 %v396_v46  ;;  %v560_v27 = vcombine.high %v1198_v10, %v1198_v10  ;;  %s988_s15 = smov [#allocation7]  }
  0x5f   : > { %vm300_vm2 = vcmp.eq.s32.totalorder %v1179_v1, %v295_v7  ;;  %vm301_vm3 = vcmp.eq.s32.totalorder %v1179_v1, %v299_v8  ;;  %v1207_v13 = vrot.slane %v1200_v11, %v1191_v4  ;;  %v1211_v14 = vrot.slane %v1200_v11, %v1185_v3  ;;  %p898_p4 = pnand %p897_p0, %p1366_p7  ;;  %s900_s9 = sshll.u32 %s988_s15, 4  ;;  %s901_s9 = int_to_ptr.vmem [resolvable:$false] %s900_s9 }
  0x60   : > { %v333_v30 = vrot.slane %v328_v28, %v1191_v4  ;;  %v337_v31 = vrot.slane %v328_v28, %v1224_v22  ;;  %v503_v35 = vrot.slane %v498_v32, %v1191_v4  ;;  %v507_v36 = vrot.slane %v498_v32, %v1224_v22  ;;  %s902_s22 = scalar_lea.vmem %s901_s9, 128  ;;  %p903_p12 = scmp.lt.s32.totalorder %s1302_s29, %s901_s9 }
  0x61   : > { %v1217_v18 = vsel %vm300_vm2, %v1207_v13, 0.0  ;;  %v1220_v19 = vsel %vm301_vm3, %v1211_v14, 0.0  ;;  %v400_v57 = vsub.s32 %v397_v50, %v1179_v1  ;;  %vm573_vm10 = vcmask 44072   ;;  %p899_p10 = pneg %p898_p4  ;;  %p904_p1 = scmp.lt.s32.totalorder %s902_s22, %s896_s5 }
  0x62   : > { %v455_v23 = vsel %vm433_vm4, %v1217_v18, 0.0  ;;  %v456_v24 = vsel %vm433_vm4, %v1220_v19, 0.0  ;;  %v343_v33 = vrot.slane %v333_v30, %v1191_v4  ;;  %v347_v34 = vrot.slane %v337_v31, %v1191_v4 }
  0x63   : > { %v457_v25 = vadd.f32 %v456_v24, %v455_v23  ;;  %v513_v38 = vrot.slane %v503_v35, %v1191_v4  ;;  %v517_v39 = vrot.slane %v507_v36, %v1191_v4  ;;  %v427_v29 = vcombine.low %v1217_v18, %v1220_v19  ;;  %p905_p2 = por %p904_p1, %p903_p12 }
  0x64   : > { %v350_v37 = vcombine.low %v343_v33, %v347_v34  ;;  %vm584_vm11 = vcmask 52272  }
  0x65   : > { %458 = vadd.xlane.f32.xlu1 %v457_v25  ;;  %v520_v41 = vcombine.low %v513_v38, %v517_v39  ;;  %p906_p9 = pnand %p905_p2, %p899_p10 }
  0x66   : > { %v352_v40 = vsub.f32 %v1193_v6, %v350_v37 }
  0x67   : > { %v522_v43 = vsub.f32 %v1198_v10, %v520_v41 }
  0x68   : > { %v353_v42 = vmul.f32 1.442695, %v352_v40 }
  0x69   : > { %v523_v44 = vmul.f32 1.442695, %v522_v43 }
  0x6a   : > { %826 = vpow2.f32 %v353_v42 }
  0x6b   : > { %828 = vpow2.f32 %v523_v44 }
  0x74   : > { %v827_v47 = vpop.eup %826 }
  0x75   : > { %v741_v48 = vrot.slane %v827_v47, 9  ;;  %v742_v49 = vrot.slane %v827_v47, 10  ;;  %v829_v51 = vpop.eup %828  ;;  %v743_v53 = vrot.slane %v827_v47, 11 }
  0x76   : > { %v747_v54 = vrot.slane %v829_v51, 9  ;;  %v748_v55 = vrot.slane %v829_v51, 10  ;;  %v749_v59 = vrot.slane %v829_v51, 11 }
  0x77   : > { %v359_v52 = vadd.f32 %v827_v47, %v741_v48 }
  0x78   : > { %v529_v58 = vadd.f32 %v829_v51, %v747_v54 }
  0x79   : > { %v363_v56 = vadd.f32 %v742_v49, %v359_v52 }
  0x7a   : > { %v533_v61 = vadd.f32 %v748_v55, %v529_v58 }
  0x7b   : > { %v367_v60 = vadd.f32 %v743_v53, %v363_v56 }
  0x7c   : > { %v537_v63 = vadd.f32 %v749_v59, %v533_v61 }
  0x7d   : > { %v401_v62 = vrot.slane %v367_v60, %v400_v57  ;;  %830 = vlog2.f32 %v367_v60 }
  0x7e   : > { %832 = vlog2.f32 %v537_v63 }
  0x7f   : > { %v408_v0 = vrot.slane %v401_v62, %v400_v57 }
  0x81   : > { %834 = vrcp.f32 %v408_v0 }
  0x87   : > { %v831_v2 = vpop.eup %830 }
  0x88   : > { %v369_v5 = vmul.f32 0.6931472, %v831_v2  ;;  %v833_v7 = vpop.eup %832 }
  0x89   : > { %v539_v12 = vmul.f32 0.6931472, %v833_v7 }
  0x8a   : > { %v370_v8 = vadd.f32 %v369_v5, %v328_v28 }
  0x8b   : > { %v835_v9 = vpop.eup %834  ;;  %v540_v20 = vadd.f32 %v539_v12, %v498_v32 }
  0x8c   : > { %v411_v15 = vmul.f32 %v835_v9, %v1200_v11  ;;  %v375_v1 = vrot.slane %v370_v8, %v1191_v4  ;;  %v379_v16 = vrot.slane %v370_v8, %v1224_v22 }
  0x8d   : > { %v545_v26 = vrot.slane %v540_v20, %v1191_v4  ;;  %v549_v11 = vrot.slane %v540_v20, %v1224_v22 }
  0x8e   : > { %v416_v21 = vrot.slane %v411_v15, %v1191_v4  ;;  %v420_v23 = vrot.slane %v411_v15, %v1185_v3  ;;  %v385_v24 = vrot.slane %v375_v1, %v1191_v4  ;;  %v389_v25 = vrot.slane %v379_v16, %v1191_v4 }
  0x8f   : > { %v555_v3 = vrot.slane %v545_v26, %v1191_v4  ;;  %v559_v32 = vrot.slane %v549_v11, %v1191_v4 }
  0x90   : > { %v421_v28 = vcombine.low %v416_v21, %v420_v23  ;;  %v392_v30 = vsub.f32 %v385_v24, %v1193_v6  ;;  %v393_v31 = vsub.f32 %v389_v25, %v390_v17 }
  0x91   : > { %v562_v37 = vsub.f32 %v555_v3, %v1198_v10  ;;  %v563_v38 = vsub.f32 %v559_v32, %v560_v27 }
  0x92   : > { %v423_v33 = vmul.f32 %v827_v47, %v421_v28  ;;  %v464_v34 = vmul.f32 %v392_v30, %v1217_v18  ;;  %v465_v35 = vmul.f32 %v393_v31, %v1220_v19  ;;  %v475_v22 = vmul.f32 %v392_v30, %v1207_v13 }
  0x93   : > { %v476_v36 = vmul.f32 %v393_v31, %v1211_v14  ;;  %v565_v43 = vmul.f32 %v562_v37, %v1217_v18  ;;  %v566_v48 = vmul.f32 %v563_v38, %v1220_v19  ;;  %v576_v52 = vmul.f32 %v562_v37, %v1207_v13  ;;  %v424_v13 = vld [vmem:[%s1181_s6] sm:$0xf] }
  0x94   : > { %v429_v39 = vmul.f32 %v427_v29, %v423_v33  ;;  %v444_v40 = vcombine.high %v423_v33, %v423_v33  ;;  %v466_v6 = vsel %vm433_vm4, %v464_v34, 0.0  ;;  %v467_v41 = vsel %vm433_vm4, %v465_v35, 0.0 }
  0x95   : > { %v477_v4 = vsel %vm433_vm4, %v475_v22, 0.0  ;;  %v478_v42 = vsel %vm433_vm4, %v476_v36, 0.0  ;;  %v468_v46 = vadd.f32 %v467_v41, %v466_v6  ;;  %v446_v47 = vsel %vm433_vm4, %v423_v33, 0.0 }
  0x96   : > { %v431_v44 = vcombine.high %v429_v39, %v429_v39  ;;  %v434_v45 = vsel %vm433_vm4, %v429_v39, 0.0  ;;  %v479_v10 = vadd.f32 %v478_v42, %v477_v4  ;;  %v567_v49 = vsel %vm433_vm4, %v565_v43, 0.0 }
  0x97   : > { %v447_v51 = vsel %vm433_vm4, %v444_v40, 0.0  ;;  %469 = vadd.xlane.f32.xlu1 %v468_v46  ;;  %v577_v18 = vmul.f32 %v563_v38, %v1211_v14  ;;  %v568_v54 = vsel %vm433_vm4, %v566_v48, 0.0  ;;  %v578_v56 = vsel %vm433_vm4, %v576_v52, 0.0 }
  0x98   : > { %v435_v50 = vsel %vm433_vm4, %v431_v44, 0.0  ;;  %v569_v55 = vadd.f32 %v568_v54, %v567_v49  ;;  %v448_v57 = vadd.f32 %v447_v51, %v446_v47 }
  0x99   : > { %v436_v53 = vadd.f32 %v435_v50, %v434_v45  ;;  %v579_v19 = vsel %vm433_vm4, %v577_v18, 0.0 }
  0x9a   : > { %v580_v58 = vadd.f32 %v579_v19, %v578_v56 }
  0x9b   : > { %437 = vadd.xlane.f32.xlu0 %v436_v53  ;;  %570 = vadd.xlane.f32.xlu1 %v569_v55 }
  0x9f   : > { %449 = vadd.xlane.f32.xlu0 %v448_v57 }
  0xa3   : > { %480 = vadd.xlane.f32.xlu0 %v479_v10 }
  0xa7   : > { %581 = vadd.xlane.f32.xlu0 %v580_v58 }
  0xf2   : > { %v459_v63 = vpop.xlane.xlu1 %458 }
 0x124   : > { %v470_v5 = vpop.xlane.xlu1 %469 }
 0x128   : > { %v438_v14 = vpop.xlane.xlu0 %437  ;;  %v571_v1 = vpop.xlane.xlu1 %570 }
 0x129   : > { %v439_v59 = vadd.f32 %v438_v14, %v424_v13 }
 0x12b   : > { %441 = vst.msk [vmem:[%s1181_s6] sm:$0xf] %vm440_vm5, %v439_v59 }
 0x12c   : > { %v450_v60 = vpop.xlane.xlu0 %449 }
 0x130   : > { %v481_v9 = vpop.xlane.xlu0 %480 }
 0x132   : > { %v442_v61 = vld [vmem:[%s1181_s6] sm:$0xf] }
 0x133   : > { %v451_v62 = vadd.f32 %v450_v60, %v442_v61 }
 0x134   : > { %v582_v20 = vpop.xlane.xlu0 %581 }
 0x135   : > { %453 = vst.msk [vmem:[%s1181_s6] sm:$0xf] %vm452_vm6, %v451_v62 }
 0x13c   : > { %v454_v0 = vld [vmem:[%s1181_s6] sm:$0xf] }
 0x13d   : > { %v460_v2 = vadd.f32 %v459_v63, %v454_v0 }
 0x13f   : > { %462 = vst.msk [vmem:[%s1181_s6] sm:$0xf] %vm461_vm7, %v460_v2 }
 0x146   : > { %v463_v7 = vld [vmem:[%s1181_s6] sm:$0xf] }
 0x147   : > { %v471_v8 = vadd.f32 %v470_v5, %v463_v7 }
 0x149   : > { %473 = vst.msk [vmem:[%s1181_s6] sm:$0xf] %vm472_vm8, %v471_v8 }
 0x150   : > { %v474_v12 = vld [vmem:[%s1181_s6] sm:$0xf] }
 0x151   : > { %v482_v15 = vadd.f32 %v481_v9, %v474_v12 }
 0x153   : > { %484 = vst.msk [vmem:[%s1181_s6] sm:$0xf] %vm483_vm9, %v482_v15 }
 0x15a   : > { %v564_v16 = vld [vmem:[%s1181_s6] sm:$0xf] }
 0x15b   : > { %v572_v17 = vadd.f32 %v571_v1, %v564_v16 }
 0x15d   : > { %574 = vst.msk [vmem:[%s1181_s6] sm:$0xf] %vm573_vm10, %v572_v17 }
 0x164   : > { %v575_v21 = vld [vmem:[%s1181_s6] sm:$0xf] }
 0x165   : > { %v583_v23 = vadd.f32 %v582_v20, %v575_v21 }
 0x167   : > { %585 = vst.msk [vmem:[%s1181_s6] sm:$0xf] %vm584_vm11, %v583_v23 }
 0x168   : > { %909 = shalt.err (!%p906_p9)
}
 0x169   : > { %s910_s23 = scalar_lea.hbm %s1300_s8, 64  ;;  %s914_s6 = scalar_lea.hbm %s1353_s3, 128 }
 0x16a   : > { %p911_p11 = scmp.ne.s32.totalorder %s1300_s8, %s910_s23  ;;  %p915_p13 = scmp.lt.u32.totalorder %s1300_s8, %s1353_s3 }
 0x16b   : > { %p916_p5 = scmp.lt.u32.totalorder %s914_s6, %s910_s23  ;;  %p918_p0 = scmp.lt.u32.totalorder %s910_s23, %s1300_s8 }
 0x16c   : > { %p912_p3 = pnand %p911_p11, %p1366_p7 }
 0x16d   : > { %p917_p8 = por %p916_p5, %p915_p13 }
 0x16e   : > { %p913_p6 = pneg %p912_p3 }
 0x16f   : > { %p919_p4 = por %p918_p0, %p917_p8 }
 0x171   : > { %p920_p10 = pnand %p919_p4, %p913_p6 }
 0x173   : > { %923 = shalt.err (!%p920_p10)
}
 0x174   : > { %760 = dma.vmem_to_hbm [thread:$0]  (%p1366_p7), %s1302_s29, 64, %s1300_s8, %s587_s10  }
 0x175 PF: > { %s612_s7 = sand.u32 1, %s962_s12   ;;  %p1367_p12 = scmp.ne.s32.totalorder %s1359_s27, 0 }
 0x176   : > { %p1368_p1 = scmp.ge.s32.totalorder %s982_s17, 2  ;;  %s613_s18 = scalar_lea.sflag [#allocation4], %s612_s7 }
 0x178   : > { %p770_p2 = pnand %p1368_p1, %p1367_p12 }
 0x17a   : > { %957 = dma.done.wait (!%p770_p2), %s613_s18, 64  }
 0x17b   : > { %959 = vsyncadd (!%p770_p2), %s613_s18, 4294967232  ;;  %s22_s17 = sadd.s32 1, %s982_s17   ;;  %s1369_s12 = smov %s966_s13 }
 0x17c   : > { %p19_p9 = scmp.ge.s32.totalorder %s22_s17, 4   ;;  %s1370_s13 = smov %s970_s14 }
 0x17d   : > { %s1371_s14 = smov %s1065_s26  ;;  %s1372_s15 = smov %s978_s16 }
 0x17e   : > { %s1373_s16 = smov %s1375_s20  ;;  %21 = sbr.rel (!%p19_p9) target bundleno = 8 (0x8), region = 97 }
 0x185   :  { %618 = vsyncpa [#allocation3], 1 }
 0x186   :  { %620 = vsyncpa [#allocation3 + $0x1], 1 }
 0x187   :  { %621 = vsyncpa [#allocation6], 1 }
 0x188   :  { %623 = vsyncpa [#allocation6 + $0x1], 1 }
 0x189   :  { %624 = vsyncpa [#allocation4], 1 }
 0x18a   :  { %626 = vsyncpa [#allocation4 + $0x1], 1 }

</bundles_post_ra>
